<compile_context>
chip_gen: v6e
topology: v6e:2x2x1
jax: 0.10.0
libtpu: 0.0.40
codegen_flags: <defaults>
</compile_context>

<pallas_src>
import functools

import jax
import jax.numpy as jnp
from jax import lax
from jax.experimental import pallas as pl
from jax.experimental.pallas import tpu as pltpu

LN_EPS = 1e-5


# ---------------------------------------------------------------------------
# In-kernel helpers
# ---------------------------------------------------------------------------
def _layer_norm(x, gamma, beta):
    mu = jnp.mean(x, axis=-1, keepdims=True)
    var = jnp.mean(jnp.square(x - mu), axis=-1, keepdims=True)
    return (x - mu) * lax.rsqrt(var + LN_EPS) * gamma + beta


# ---------------------------------------------------------------------------
# Kernels (one batch element per grid step, everything fused inside)
# ---------------------------------------------------------------------------
def embed_pe_kernel(x_ref, w_ref, b_ref, pe_ref, o_ref):
    """fc_embedding + Positional_Encoding:  o = x @ W + b + PE."""
    y = jnp.dot(x_ref[...], w_ref[...], preferred_element_type=jnp.float32)
    o_ref[...] = (y + b_ref[...] + pe_ref[...]).astype(o_ref.dtype)


def qkv_kernel(x_ref, w_ref, b_ref, o_ref):
    """Q, K, V projections collapsed into a single (E x 3E) matmul."""
    y = jnp.dot(x_ref[...], w_ref[...], preferred_element_type=jnp.float32)
    o_ref[...] = (y + b_ref[...]).astype(o_ref.dtype)


def attn_kernel(q_ref, k_ref, v_ref, o_ref):
    """Scaled dot-product attention for all heads of one batch element."""
    q = q_ref[...].astype(jnp.float32)
    k = k_ref[...].astype(jnp.float32)
    v = v_ref[...].astype(jnp.float32)
    scale = q.shape[-1] ** -0.5                       # dim_head ** -0.5
    s = jnp.einsum("hqd,hkd->hqk", q, k, preferred_element_type=jnp.float32)
    s = s * scale
    m = jnp.max(s, axis=-1, keepdims=True)            # numerically stable softmax
    p = jnp.exp(s - m)
    attn = p / jnp.sum(p, axis=-1, keepdims=True)
    ctx = jnp.einsum("hqk,hkd->hqd", attn, v, preferred_element_type=jnp.float32)
    o_ref[...] = ctx.astype(o_ref.dtype)


def tail_kernel(ctx_ref, x_ref, wo_ref, bo_ref, g1_ref, be1_ref,
                w1_ref, b1_ref, w2_ref, b2_ref, g2_ref, be2_ref, o_ref):
    """fc(context)+residual+LayerNorm, then the full FFN block, all fused."""
    x = x_ref[...].astype(jnp.float32)
    ctx = ctx_ref[...].astype(jnp.float32)
    h = jnp.dot(ctx, wo_ref[...], preferred_element_type=jnp.float32)
    h = h + bo_ref[...] + x
    h = _layer_norm(h, g1_ref[...], be1_ref[...])
    f = jnp.dot(h, w1_ref[...], preferred_element_type=jnp.float32) + b1_ref[...]
    f = jnp.maximum(f, 0.0)                                          # ReLU
    f = jnp.dot(f, w2_ref[...], preferred_element_type=jnp.float32)
    f = f + b2_ref[...] + h
    o_ref[...] = _layer_norm(f, g2_ref[...], be2_ref[...]).astype(o_ref.dtype)


def head_kernel(x_ref, w1_ref, b1_ref, w2_ref, b2_ref, o_ref):
    """last_fc: Linear -> ReLU -> (Dropout=identity) -> Linear."""
    h = jnp.dot(x_ref[...], w1_ref[...], preferred_element_type=jnp.float32)
    h = jnp.maximum(h + b1_ref[...], 0.0)
    y = jnp.dot(h, w2_ref[...], preferred_element_type=jnp.float32) + b2_ref[...]
    o_ref[...] = y.astype(o_ref.dtype)


# ---------------------------------------------------------------------------
# pallas_call plumbing
# ---------------------------------------------------------------------------
def _bcast(shape):
    """Operand identical for every grid step (weights, biases, PE)."""
    n = len(shape)
    return pl.BlockSpec(shape, lambda b: (0,) * n)


def _batched(shape):
    """Operand whose leading dim is blocked over the batch grid."""
    n = len(shape)
    return pl.BlockSpec(shape, lambda b: (b,) + (0,) * (n - 1))


def _call(kernel, grid, in_specs, out_spec, out_shape, args, parallel=True):
    sem = ("parallel",) if parallel else ("arbitrary",)
    return pl.pallas_call(
        kernel,
        out_shape=out_shape,
        grid_spec=pltpu.PrefetchScalarGridSpec(
            num_scalar_prefetch=0,
            grid=grid,
            in_specs=in_specs,
            out_specs=out_spec,
        ),
        compiler_params=pltpu.CompilerParams(dimension_semantics=sem),
    )(*args)


def _make_pe(seq_len, embed):
    pos = jnp.arange(seq_len, dtype=jnp.float32)[:, None]
    idx = jnp.arange(embed)[None, :]
    angle = pos / jnp.power(10000.0, (idx // 2 * 2.0) / embed)
    return jnp.where(idx % 2 == 0, jnp.sin(angle), jnp.cos(angle)).astype(jnp.float32)


# ---------------------------------------------------------------------------
# Full TCNN1d forward (Pallas)
# ---------------------------------------------------------------------------
@functools.partial(jax.jit, static_argnums=(2,))
def tcnn1d_forward(x, params, num_head):
    B, S, In = x.shape
    E = params["emb_w"].shape[0]
    dh = E // num_head
    f32 = jnp.float32

    # fc_embedding + positional encoding (one fused kernel)
    pe = _make_pe(S, E)
    h = _call(
        embed_pe_kernel, (B,),
        [_batched((S, In)), _bcast((In, E)), _bcast((1, E)), _bcast((S, E))],
        _batched((S, E)),
        jax.ShapeDtypeStruct((B * S, E), f32),
        (x.reshape(B * S, In), params["emb_w"].T, params["emb_b"].reshape(1, E), pe),
    )

    # encoder stack
    for lp in params["encoders"]:
        hid = lp["w1"].shape[0]
        # Q/K/V projections fused into a single matmul (E x 3E).
        wqkv = jnp.concatenate([lp["wq"].T, lp["wk"].T, lp["wv"].T], axis=1)
        bqkv = jnp.concatenate([lp["bq"], lp["bk"], lp["bv"]]).reshape(1, 3 * E)
        qkv = _call(
            qkv_kernel, (B,),
            [_batched((S, E)), _bcast((E, 3 * E)), _bcast((1, 3 * E))],
            _batched((S, 3 * E)),
            jax.ShapeDtypeStruct((B * S, 3 * E), f32),
            (h, wqkv, bqkv),
        )
        # PyTorch contiguous .view(batch*num_head, -1, dim_head) head split:
        # a free metadata reshape, done outside the kernel.
        q = qkv[:, :E].reshape(B * num_head, S, dh)
        k = qkv[:, E:2 * E].reshape(B * num_head, S, dh)
        v = qkv[:, 2 * E:].reshape(B * num_head, S, dh)

        ctx = _call(
            attn_kernel, (B,),
            [_batched((num_head, S, dh))] * 3,
            _batched((num_head, S, dh)),
            jax.ShapeDtypeStruct((B * num_head, S, dh), f32),
            (q, k, v),
        )
        ctx = ctx.reshape(B * S, E)      # context.view(batch, -1, E)

        # out-projection + residual + LN + FFN + residual + LN, fused
        h = _call(
            tail_kernel, (B,),
            [_batched((S, E)), _batched((S, E)),
             _bcast((E, E)), _bcast((1, E)), _bcast((1, E)), _bcast((1, E)),
             _bcast((E, hid)), _bcast((1, hid)),
             _bcast((hid, E)), _bcast((1, E)),
             _bcast((1, E)), _bcast((1, E))],
            _batched((S, E)),
            jax.ShapeDtypeStruct((B * S, E), f32),
            (ctx, h,
             lp["wo"].T, lp["bo"].reshape(1, E),
             lp["ln1_g"].reshape(1, E), lp["ln1_b"].reshape(1, E),
             lp["w1"].T, lp["b1"].reshape(1, hid),
             lp["w2"].T, lp["b2"].reshape(1, E),
             lp["ln2_g"].reshape(1, E), lp["ln2_b"].reshape(1, E)),
        )

    # flatten + last_fc (fused two-matmul head)
    flat = h.reshape(B, S * E)
    hid = params["f1_w"].shape[0]
    out_dim = params["f2_w"].shape[0]
    out = _call(
        head_kernel, (1,),
        [_bcast((B, S * E)), _bcast((S * E, hid)), _bcast((1, hid)),
         _bcast((hid, out_dim)), _bcast((1, out_dim))],
        _bcast((B, out_dim)),
        jax.ShapeDtypeStruct((B, out_dim), f32),
        (flat, params["f1_w"].T, params["f1_b"].reshape(1, hid),
         params["f2_w"].T, params["f2_b"].reshape(1, out_dim)),
        parallel=False,
    )
    return out


# ---------------------------------------------------------------------------
# Pure-JAX reference (mirrors the PyTorch forward) + parameter init
# ---------------------------------------------------------------------------
def _reference(x, params, num_head):
    hp = lax.Precision.HIGHEST
    B, S, _ = x.shape
    E = params["emb_w"].shape[0]
    dh = E // num_head

    def linear(t, w, b):                       # torch nn.Linear: t @ W^T + b
        return jnp.einsum("...i,oi->...o", t, w, precision=hp) + b

    def layer_norm(t, g, b):
        mu = jnp.mean(t, axis=-1, keepdims=True)
        var = jnp.mean(jnp.square(t - mu), axis=-1, keepdims=True)
        return (t - mu) / jnp.sqrt(var + LN_EPS) * g + b

    h = linear(x, params["emb_w"], params["emb_b"]) + _make_pe(S, E)[None]
    for lp in params["encoders"]:
        q = linear(h, lp["wq"], lp["bq"]).reshape(B * num_head, S, dh)
        k = linear(h, lp["wk"], lp["bk"]).reshape(B * num_head, S, dh)
        v = linear(h, lp["wv"], lp["bv"]).reshape(B * num_head, S, dh)
        att = jnp.einsum("gqd,gkd->gqk", q, k, precision=hp) * dh ** -0.5
        att = jax.nn.softmax(att, axis=-1)
        ctx = jnp.einsum("gqk,gkd->gqd", att, v, precision=hp).reshape(B, S, E)
        o = layer_norm(linear(ctx, lp["wo"], lp["bo"]) + h, lp["ln1_g"], lp["ln1_b"])
        f = jax.nn.relu(linear(o, lp["w1"], lp["b1"]))
        f = linear(f, lp["w2"], lp["b2"]) + o
        h = layer_norm(f, lp["ln2_g"], lp["ln2_b"])
    flat = h.reshape(B, S * E)
    z = jax.nn.relu(linear(flat, params["f1_w"], params["f1_b"]))
    return linear(z, params["f2_w"], params["f2_b"])


def init_params(key, input_size, embedding, window_size, num_head,
                hidden, num_encoder, output_size):
    keys = iter(jax.random.split(key, 6 + 16 * num_encoder))

    def nrm(shape, scale=0.1):
        return scale * jax.random.normal(next(keys), shape, dtype=jnp.float32)

    params = {
        "emb_w": nrm((embedding, input_size)), "emb_b": nrm((embedding,)),
        "f1_w": nrm((hidden, embedding * window_size)), "f1_b": nrm((hidden,)),
        "f2_w": nrm((output_size, hidden)), "f2_b": nrm((output_size,)),
        "encoders": [],
    }
    for _ in range(num_encoder):
        params["encoders"].append({
            "wq": nrm((embedding, embedding)), "bq": nrm((embedding,)),
            "wk": nrm((embedding, embedding)), "bk": nrm((embedding,)),
            "wv": nrm((embedding, embedding)), "bv": nrm((embedding,)),
            "wo": nrm((embedding, embedding)), "bo": nrm((embedding,)),
            "ln1_g": 1.0 + nrm((embedding,)), "ln1_b": nrm((embedding,)),
            "w1": nrm((hidden, embedding)), "b1": nrm((hidden,)),
            "w2": nrm((embedding, hidden)), "b2": nrm((embedding,)),
            "ln2_g": 1.0 + nrm((embedding,)), "ln2_b": nrm((embedding,)),
        })
    return params


if __name__ == "__main__":
    # Small config implied by TCNN1d's forward.
    B = 2                # batch
    input_size = 16      # config.input_size
    embedding = 32       # config.embedding (dim_model)
    window_size = 8      # config.window_size (sequence length)
    num_head = 4         # config.num_head
    hidden = 32          # config.hidden
    num_encoder = 2      # config.num_encoder
    output_size = 4      # config.output_size

    key = jax.random.PRNGKey(0)
    kx, kp = jax.random.split(key)
    x = jax.random.normal(kx, (B, window_size, input_size), dtype=jnp.float32)
    params = init_params(kp, input_size, embedding, window_size, num_head,
                         hidden, num_encoder, output_size)

    out = tcnn1d_forward(x, params, num_head)
    out = jax.block_until_ready(out)

    ref = _reference(x, params, num_head)
    assert out.shape == (B, output_size), out.shape
    assert jnp.allclose(out, ref, atol=1e-3, rtol=1e-3), \
        float(jnp.max(jnp.abs(out - ref)))

    print("KERNEL_OK")
</pallas_src>

<mosaic_0001>
module attributes {stable_mosaic.version = 11 : i64} {
  func.func @embed_pe_kernel(%arg0: i32, %arg1: memref<8x16xf32, #tpu.memory_space<vmem>>, %arg2: memref<16x32xf32, #tpu.memory_space<vmem>>, %arg3: memref<1x32xf32, #tpu.memory_space<vmem>>, %arg4: memref<8x32xf32, #tpu.memory_space<vmem>>, %arg5: memref<8x32xf32, #tpu.memory_space<vmem>>) attributes {dimension_semantics = [#tpu.dimension_semantics<parallel>], iteration_bounds = array<i64: 2>, scalar_prefetch = 0 : i64, scratch_operands = 0 : i64, tpu.core_type = #tpu.core_type<tc>, window_params = [{transform_indices = @transform_0, window_bounds = array<i64: 8, 16>}, {pipeline_mode = #tpu.pipeline_mode<synchronous>, transform_indices = @transform_1, window_bounds = array<i64: 16, 32>}, {pipeline_mode = #tpu.pipeline_mode<synchronous>, transform_indices = @transform_2, window_bounds = array<i64: 1, 32>}, {pipeline_mode = #tpu.pipeline_mode<synchronous>, transform_indices = @transform_3, window_bounds = array<i64: 8, 32>}, {transform_indices = @transform_4, window_bounds = array<i64: 8, 32>}]} {
    %c0 = arith.constant 0 : index
    %c0_0 = arith.constant 0 : index
    %0 = vector.load %arg1[%c0, %c0_0] : memref<8x16xf32, #tpu.memory_space<vmem>>, vector<8x16xf32>
    %c0_1 = arith.constant 0 : index
    %c0_2 = arith.constant 0 : index
    %1 = vector.load %arg2[%c0_1, %c0_2] : memref<16x32xf32, #tpu.memory_space<vmem>>, vector<16x32xf32>
    %cst = arith.constant dense<0.000000e+00> : vector<8x32xf32>
    %2 = tpu.matmul %0, %1, %cst {dimension_numbers = #tpu.dot_dimension_numbers<[1], [0], [0], [1], [0, 0, 1, 1], [], []>} : vector<8x16xf32>, vector<16x32xf32>, vector<8x32xf32> -> vector<8x32xf32>
    %c0_3 = arith.constant 0 : index
    %c0_4 = arith.constant 0 : index
    %3 = vector.load %arg3[%c0_3, %c0_4] : memref<1x32xf32, #tpu.memory_space<vmem>>, vector<1x32xf32>
    %4 = vector.broadcast %3 : vector<1x32xf32> to vector<8x32xf32>
    %5 = arith.addf %2, %4 : vector<8x32xf32>
    %c0_5 = arith.constant 0 : index
    %c0_6 = arith.constant 0 : index
    %6 = vector.load %arg4[%c0_5, %c0_6] : memref<8x32xf32, #tpu.memory_space<vmem>>, vector<8x32xf32>
    %7 = arith.addf %5, %6 : vector<8x32xf32>
    %c0_7 = arith.constant 0 : index
    %c0_8 = arith.constant 0 : index
    %8 = vector.load %arg5[%c0_7, %c0_8] : memref<8x32xf32, #tpu.memory_space<vmem>>, vector<8x32xf32>
    tpu.vector_store %arg5[%c0_7, %c0_8], %7 {strides = array<i32>} : memref<8x32xf32, #tpu.memory_space<vmem>>, vector<8x32xf32>,
    return
  }
  func.func @transform_0(%arg0: i32) -> (i32, i32) {
    %c0_i32 = arith.constant 0 : i32
    %c0_i32_0 = arith.constant 0 : i32
    return %arg0, %c0_i32 : i32, i32
  }
  func.func @transform_1(%arg0: i32) -> (i32, i32) {
    %c0_i32 = arith.constant 0 : i32
    %c0_i32_0 = arith.constant 0 : i32
    %c0_i32_1 = arith.constant 0 : i32
    return %c0_i32, %c0_i32_0 : i32, i32
  }
  func.func @transform_2(%arg0: i32) -> (i32, i32) {
    %c0_i32 = arith.constant 0 : i32
    %c0_i32_0 = arith.constant 0 : i32
    %c0_i32_1 = arith.constant 0 : i32
    return %c0_i32, %c0_i32_0 : i32, i32
  }
  func.func @transform_3(%arg0: i32) -> (i32, i32) {
    %c0_i32 = arith.constant 0 : i32
    %c0_i32_0 = arith.constant 0 : i32
    %c0_i32_1 = arith.constant 0 : i32
    return %c0_i32, %c0_i32_0 : i32, i32
  }
  func.func @transform_4(%arg0: i32) -> (i32, i32) {
    %c0_i32 = arith.constant 0 : i32
    %c0_i32_0 = arith.constant 0 : i32
    return %arg0, %c0_i32 : i32, i32
  }
}

module attributes {stable_mosaic.version = 11 : i64} {
  func.func @qkv_kernel(%arg0: i32, %arg1: memref<8x32xf32, #tpu.memory_space<vmem>>, %arg2: memref<32x96xf32, #tpu.memory_space<vmem>>, %arg3: memref<1x96xf32, #tpu.memory_space<vmem>>, %arg4: memref<8x96xf32, #tpu.memory_space<vmem>>) attributes {dimension_semantics = [#tpu.dimension_semantics<parallel>], iteration_bounds = array<i64: 2>, scalar_prefetch = 0 : i64, scratch_operands = 0 : i64, tpu.core_type = #tpu.core_type<tc>, window_params = [{transform_indices = @transform_0, window_bounds = array<i64: 8, 32>}, {pipeline_mode = #tpu.pipeline_mode<synchronous>, transform_indices = @transform_1, window_bounds = array<i64: 32, 96>}, {pipeline_mode = #tpu.pipeline_mode<synchronous>, transform_indices = @transform_2, window_bounds = array<i64: 1, 96>}, {transform_indices = @transform_3, window_bounds = array<i64: 8, 96>}]} {
    %c0 = arith.constant 0 : index
    %c0_0 = arith.constant 0 : index
    %0 = vector.load %arg1[%c0, %c0_0] : memref<8x32xf32, #tpu.memory_space<vmem>>, vector<8x32xf32>
    %c0_1 = arith.constant 0 : index
    %c0_2 = arith.constant 0 : index
    %1 = vector.load %arg2[%c0_1, %c0_2] : memref<32x96xf32, #tpu.memory_space<vmem>>, vector<32x96xf32>
    %cst = arith.constant dense<0.000000e+00> : vector<8x96xf32>
    %2 = tpu.matmul %0, %1, %cst {dimension_numbers = #tpu.dot_dimension_numbers<[1], [0], [0], [1], [0, 0, 1, 1], [], []>} : vector<8x32xf32>, vector<32x96xf32>, vector<8x96xf32> -> vector<8x96xf32>
    %c0_3 = arith.constant 0 : index
    %c0_4 = arith.constant 0 : index
    %3 = vector.load %arg3[%c0_3, %c0_4] : memref<1x96xf32, #tpu.memory_space<vmem>>, vector<1x96xf32>
    %4 = vector.broadcast %3 : vector<1x96xf32> to vector<8x96xf32>
    %5 = arith.addf %2, %4 : vector<8x96xf32>
    %c0_5 = arith.constant 0 : index
    %c0_6 = arith.constant 0 : index
    %6 = vector.load %arg4[%c0_5, %c0_6] : memref<8x96xf32, #tpu.memory_space<vmem>>, vector<8x96xf32>
    tpu.vector_store %arg4[%c0_5, %c0_6], %5 {strides = array<i32>} : memref<8x96xf32, #tpu.memory_space<vmem>>, vector<8x96xf32>,
    return
  }
  func.func @transform_0(%arg0: i32) -> (i32, i32) {
    %c0_i32 = arith.constant 0 : i32
    %c0_i32_0 = arith.constant 0 : i32
    return %arg0, %c0_i32 : i32, i32
  }
  func.func @transform_1(%arg0: i32) -> (i32, i32) {
    %c0_i32 = arith.constant 0 : i32
    %c0_i32_0 = arith.constant 0 : i32
    %c0_i32_1 = arith.constant 0 : i32
    return %c0_i32, %c0_i32_0 : i32, i32
  }
  func.func @transform_2(%arg0: i32) -> (i32, i32) {
    %c0_i32 = arith.constant 0 : i32
    %c0_i32_0 = arith.constant 0 : i32
    %c0_i32_1 = arith.constant 0 : i32
    return %c0_i32, %c0_i32_0 : i32, i32
  }
  func.func @transform_3(%arg0: i32) -> (i32, i32) {
    %c0_i32 = arith.constant 0 : i32
    %c0_i32_0 = arith.constant 0 : i32
    return %arg0, %c0_i32 : i32, i32
  }
}

module attributes {stable_mosaic.version = 11 : i64} {
  func.func @tail_kernel(%arg0: i32, %arg1: memref<8x32xf32, #tpu.memory_space<vmem>>, %arg2: memref<8x32xf32, #tpu.memory_space<vmem>>, %arg3: memref<32x32xf32, #tpu.memory_space<vmem>>, %arg4: memref<1x32xf32, #tpu.memory_space<vmem>>, %arg5: memref<1x32xf32, #tpu.memory_space<vmem>>, %arg6: memref<1x32xf32, #tpu.memory_space<vmem>>, %arg7: memref<32x32xf32, #tpu.memory_space<vmem>>, %arg8: memref<1x32xf32, #tpu.memory_space<vmem>>, %arg9: memref<32x32xf32, #tpu.memory_space<vmem>>, %arg10: memref<1x32xf32, #tpu.memory_space<vmem>>, %arg11: memref<1x32xf32, #tpu.memory_space<vmem>>, %arg12: memref<1x32xf32, #tpu.memory_space<vmem>>, %arg13: memref<8x32xf32, #tpu.memory_space<vmem>>) attributes {dimension_semantics = [#tpu.dimension_semantics<parallel>], iteration_bounds = array<i64: 2>, scalar_prefetch = 0 : i64, scratch_operands = 0 : i64, tpu.core_type = #tpu.core_type<tc>, window_params = [{transform_indices = @transform_0, window_bounds = array<i64: 8, 32>}, {transform_indices = @transform_1, window_bounds = array<i64: 8, 32>}, {pipeline_mode = #tpu.pipeline_mode<synchronous>, transform_indices = @transform_2, window_bounds = array<i64: 32, 32>}, {pipeline_mode = #tpu.pipeline_mode<synchronous>, transform_indices = @transform_3, window_bounds = array<i64: 1, 32>}, {pipeline_mode = #tpu.pipeline_mode<synchronous>, transform_indices = @transform_4, window_bounds = array<i64: 1, 32>}, {pipeline_mode = #tpu.pipeline_mode<synchronous>, transform_indices = @transform_5, window_bounds = array<i64: 1, 32>}, {pipeline_mode = #tpu.pipeline_mode<synchronous>, transform_indices = @transform_6, window_bounds = array<i64: 32, 32>}, {pipeline_mode = #tpu.pipeline_mode<synchronous>, transform_indices = @transform_7, window_bounds = array<i64: 1, 32>}, {pipeline_mode = #tpu.pipeline_mode<synchronous>, transform_indices = @transform_8, window_bounds = array<i64: 32, 32>}, {pipeline_mode = #tpu.pipeline_mode<synchronous>, transform_indices = @transform_9, window_bounds = array<i64: 1, 32>}, {pipeline_mode = #tpu.pipeline_mode<synchronous>, transform_indices = @transform_10, window_bounds = array<i64: 1, 32>}, {pipeline_mode = #tpu.pipeline_mode<synchronous>, transform_indices = @transform_11, window_bounds = array<i64: 1, 32>}, {transform_indices = @transform_12, window_bounds = array<i64: 8, 32>}]} {
    %c0 = arith.constant 0 : index
    %c0_0 = arith.constant 0 : index
    %0 = vector.load %arg2[%c0, %c0_0] : memref<8x32xf32, #tpu.memory_space<vmem>>, vector<8x32xf32>
    %c0_1 = arith.constant 0 : index
    %c0_2 = arith.constant 0 : index
    %1 = vector.load %arg1[%c0_1, %c0_2] : memref<8x32xf32, #tpu.memory_space<vmem>>, vector<8x32xf32>
    %c0_3 = arith.constant 0 : index
    %c0_4 = arith.constant 0 : index
    %2 = vector.load %arg3[%c0_3, %c0_4] : memref<32x32xf32, #tpu.memory_space<vmem>>, vector<32x32xf32>
    %cst = arith.constant dense<0.000000e+00> : vector<8x32xf32>
    %3 = tpu.matmul %1, %2, %cst {dimension_numbers = #tpu.dot_dimension_numbers<[1], [0], [0], [1], [0, 0, 1, 1], [], []>} : vector<8x32xf32>, vector<32x32xf32>, vector<8x32xf32> -> vector<8x32xf32>
    %c0_5 = arith.constant 0 : index
    %c0_6 = arith.constant 0 : index
    %4 = vector.load %arg4[%c0_5, %c0_6] : memref<1x32xf32, #tpu.memory_space<vmem>>, vector<1x32xf32>
    %5 = vector.broadcast %4 : vector<1x32xf32> to vector<8x32xf32>
    %6 = arith.addf %3, %5 : vector<8x32xf32>
    %7 = arith.addf %6, %0 : vector<8x32xf32>
    %c0_7 = arith.constant 0 : index
    %c0_8 = arith.constant 0 : index
    %8 = vector.load %arg5[%c0_7, %c0_8] : memref<1x32xf32, #tpu.memory_space<vmem>>, vector<1x32xf32>
    %c0_9 = arith.constant 0 : index
    %c0_10 = arith.constant 0 : index
    %9 = vector.load %arg6[%c0_9, %c0_10] : memref<1x32xf32, #tpu.memory_space<vmem>>, vector<1x32xf32>
    %cst_11 = arith.constant dense<0.000000e+00> : vector<8xf32>
    %10 = vector.multi_reduction <add>, %7, %cst_11 [1] : vector<8x32xf32> to vector<8xf32>
    %11 = vector.shape_cast %10 : vector<8xf32> to vector<8x1xf32>
    %cst_12 = arith.constant 3.200000e+01 : f32
    %12 = vector.broadcast %cst_12 : f32 to vector<8x1xf32>
    %13 = arith.divf %11, %12 : vector<8x1xf32>
    %14 = vector.broadcast %13 : vector<8x1xf32> to vector<8x32xf32>
    %15 = arith.subf %7, %14 : vector<8x32xf32>
    %16 = arith.mulf %15, %15 : vector<8x32xf32>
    %cst_13 = arith.constant dense<0.000000e+00> : vector<8xf32>
    %17 = vector.multi_reduction <add>, %16, %cst_13 [1] : vector<8x32xf32> to vector<8xf32>
    %18 = vector.shape_cast %17 : vector<8xf32> to vector<8x1xf32>
    %cst_14 = arith.constant 3.200000e+01 : f32
    %19 = vector.broadcast %cst_14 : f32 to vector<8x1xf32>
    %20 = arith.divf %18, %19 : vector<8x1xf32>
    %21 = vector.broadcast %13 : vector<8x1xf32> to vector<8x32xf32>
    %22 = arith.subf %7, %21 : vector<8x32xf32>
    %cst_15 = arith.constant 9.99999974E-6 : f32
    %23 = vector.broadcast %cst_15 : f32 to vector<8x1xf32>
    %24 = arith.addf %20, %23 : vector<8x1xf32>
    %25 = math.rsqrt %24 : vector<8x1xf32>
    %26 = vector.broadcast %25 : vector<8x1xf32> to vector<8x32xf32>
    %27 = arith.mulf %22, %26 : vector<8x32xf32>
    %28 = vector.broadcast %8 : vector<1x32xf32> to vector<8x32xf32>
    %29 = arith.mulf %27, %28 : vector<8x32xf32>
    %30 = vector.broadcast %9 : vector<1x32xf32> to vector<8x32xf32>
    %31 = arith.addf %29, %30 : vector<8x32xf32>
    %c0_16 = arith.constant 0 : index
    %c0_17 = arith.constant 0 : index
    %32 = vector.load %arg7[%c0_16, %c0_17] : memref<32x32xf32, #tpu.memory_space<vmem>>, vector<32x32xf32>
    %cst_18 = arith.constant dense<0.000000e+00> : vector<8x32xf32>
    %33 = tpu.matmul %31, %32, %cst_18 {dimension_numbers = #tpu.dot_dimension_numbers<[1], [0], [0], [1], [0, 0, 1, 1], [], []>} : vector<8x32xf32>, vector<32x32xf32>, vector<8x32xf32> -> vector<8x32xf32>
    %c0_19 = arith.constant 0 : index
    %c0_20 = arith.constant 0 : index
    %34 = vector.load %arg8[%c0_19, %c0_20] : memref<1x32xf32, #tpu.memory_space<vmem>>, vector<1x32xf32>
    %35 = vector.broadcast %34 : vector<1x32xf32> to vector<8x32xf32>
    %36 = arith.addf %33, %35 : vector<8x32xf32>
    %cst_21 = arith.constant 0.000000e+00 : f32
    %37 = vector.broadcast %cst_21 : f32 to vector<8x32xf32>
    %38 = arith.maximumf %36, %37 : vector<8x32xf32>
    %c0_22 = arith.constant 0 : index
    %c0_23 = arith.constant 0 : index
    %39 = vector.load %arg9[%c0_22, %c0_23] : memref<32x32xf32, #tpu.memory_space<vmem>>, vector<32x32xf32>
    %cst_24 = arith.constant dense<0.000000e+00> : vector<8x32xf32>
    %40 = tpu.matmul %38, %39, %cst_24 {dimension_numbers = #tpu.dot_dimension_numbers<[1], [0], [0], [1], [0, 0, 1, 1], [], []>} : vector<8x32xf32>, vector<32x32xf32>, vector<8x32xf32> -> vector<8x32xf32>
    %c0_25 = arith.constant 0 : index
    %c0_26 = arith.constant 0 : index
    %41 = vector.load %arg10[%c0_25, %c0_26] : memref<1x32xf32, #tpu.memory_space<vmem>>, vector<1x32xf32>
    %42 = vector.broadcast %41 : vector<1x32xf32> to vector<8x32xf32>
    %43 = arith.addf %40, %42 : vector<8x32xf32>
    %44 = arith.addf %43, %31 : vector<8x32xf32>
    %c0_27 = arith.constant 0 : index
    %c0_28 = arith.constant 0 : index
    %45 = vector.load %arg11[%c0_27, %c0_28] : memref<1x32xf32, #tpu.memory_space<vmem>>, vector<1x32xf32>
    %c0_29 = arith.constant 0 : index
    %c0_30 = arith.constant 0 : index
    %46 = vector.load %arg12[%c0_29, %c0_30] : memref<1x32xf32, #tpu.memory_space<vmem>>, vector<1x32xf32>
    %cst_31 = arith.constant dense<0.000000e+00> : vector<8xf32>
    %47 = vector.multi_reduction <add>, %44, %cst_31 [1] : vector<8x32xf32> to vector<8xf32>
    %48 = vector.shape_cast %47 : vector<8xf32> to vector<8x1xf32>
    %cst_32 = arith.constant 3.200000e+01 : f32
    %49 = vector.broadcast %cst_32 : f32 to vector<8x1xf32>
    %50 = arith.divf %48, %49 : vector<8x1xf32>
    %51 = vector.broadcast %50 : vector<8x1xf32> to vector<8x32xf32>
    %52 = arith.subf %44, %51 : vector<8x32xf32>
    %53 = arith.mulf %52, %52 : vector<8x32xf32>
    %cst_33 = arith.constant dense<0.000000e+00> : vector<8xf32>
    %54 = vector.multi_reduction <add>, %53, %cst_33 [1] : vector<8x32xf32> to vector<8xf32>
    %55 = vector.shape_cast %54 : vector<8xf32> to vector<8x1xf32>
    %cst_34 = arith.constant 3.200000e+01 : f32
    %56 = vector.broadcast %cst_34 : f32 to vector<8x1xf32>
    %57 = arith.divf %55, %56 : vector<8x1xf32>
    %58 = vector.broadcast %50 : vector<8x1xf32> to vector<8x32xf32>
    %59 = arith.subf %44, %58 : vector<8x32xf32>
    %cst_35 = arith.constant 9.99999974E-6 : f32
    %60 = vector.broadcast %cst_35 : f32 to vector<8x1xf32>
    %61 = arith.addf %57, %60 : vector<8x1xf32>
    %62 = math.rsqrt %61 : vector<8x1xf32>
    %63 = vector.broadcast %62 : vector<8x1xf32> to vector<8x32xf32>
    %64 = arith.mulf %59, %63 : vector<8x32xf32>
    %65 = vector.broadcast %45 : vector<1x32xf32> to vector<8x32xf32>
    %66 = arith.mulf %64, %65 : vector<8x32xf32>
    %67 = vector.broadcast %46 : vector<1x32xf32> to vector<8x32xf32>
    %68 = arith.addf %66, %67 : vector<8x32xf32>
    %c0_36 = arith.constant 0 : index
    %c0_37 = arith.constant 0 : index
    %69 = vector.load %arg13[%c0_36, %c0_37] : memref<8x32xf32, #tpu.memory_space<vmem>>, vector<8x32xf32>
    tpu.vector_store %arg13[%c0_36, %c0_37], %68 {strides = array<i32>} : memref<8x32xf32, #tpu.memory_space<vmem>>, vector<8x32xf32>,
    return
  }
  func.func @transform_0(%arg0: i32) -> (i32, i32) {
    %c0_i32 = arith.constant 0 : i32
    %c0_i32_0 = arith.constant 0 : i32
    return %arg0, %c0_i32 : i32, i32
  }
  func.func @transform_1(%arg0: i32) -> (i32, i32) {
    %c0_i32 = arith.constant 0 : i32
    %c0_i32_0 = arith.constant 0 : i32
    return %arg0, %c0_i32 : i32, i32
  }
  func.func @transform_2(%arg0: i32) -> (i32, i32) {
    %c0_i32 = arith.constant 0 : i32
    %c0_i32_0 = arith.constant 0 : i32
    %c0_i32_1 = arith.constant 0 : i32
    return %c0_i32, %c0_i32_0 : i32, i32
  }
  func.func @transform_3(%arg0: i32) -> (i32, i32) {
    %c0_i32 = arith.constant 0 : i32
    %c0_i32_0 = arith.constant 0 : i32
    %c0_i32_1 = arith.constant 0 : i32
    return %c0_i32, %c0_i32_0 : i32, i32
  }
  func.func @transform_4(%arg0: i32) -> (i32, i32) {
    %c0_i32 = arith.constant 0 : i32
    %c0_i32_0 = arith.constant 0 : i32
    %c0_i32_1 = arith.constant 0 : i32
    return %c0_i32, %c0_i32_0 : i32, i32
  }
  func.func @transform_5(%arg0: i32) -> (i32, i32) {
    %c0_i32 = arith.constant 0 : i32
    %c0_i32_0 = arith.constant 0 : i32
    %c0_i32_1 = arith.constant 0 : i32
    return %c0_i32, %c0_i32_0 : i32, i32
  }
  func.func @transform_6(%arg0: i32) -> (i32, i32) {
    %c0_i32 = arith.constant 0 : i32
    %c0_i32_0 = arith.constant 0 : i32
    %c0_i32_1 = arith.constant 0 : i32
    return %c0_i32, %c0_i32_0 : i32, i32
  }
  func.func @transform_7(%arg0: i32) -> (i32, i32) {
    %c0_i32 = arith.constant 0 : i32
    %c0_i32_0 = arith.constant 0 : i32
    %c0_i32_1 = arith.constant 0 : i32
    return %c0_i32, %c0_i32_0 : i32, i32
  }
  func.func @transform_8(%arg0: i32) -> (i32, i32) {
    %c0_i32 = arith.constant 0 : i32
    %c0_i32_0 = arith.constant 0 : i32
    %c0_i32_1 = arith.constant 0 : i32
    return %c0_i32, %c0_i32_0 : i32, i32
  }
  func.func @transform_9(%arg0: i32) -> (i32, i32) {
    %c0_i32 = arith.constant 0 : i32
    %c0_i32_0 = arith.constant 0 : i32
    %c0_i32_1 = arith.constant 0 : i32
    return %c0_i32, %c0_i32_0 : i32, i32
  }
  func.func @transform_10(%arg0: i32) -> (i32, i32) {
    %c0_i32 = arith.constant 0 : i32
    %c0_i32_0 = arith.constant 0 : i32
    %c0_i32_1 = arith.constant 0 : i32
    return %c0_i32, %c0_i32_0 : i32, i32
  }
  func.func @transform_11(%arg0: i32) -> (i32, i32) {
    %c0_i32 = arith.constant 0 : i32
    %c0_i32_0 = arith.constant 0 : i32
    %c0_i32_1 = arith.constant 0 : i32
    return %c0_i32, %c0_i32_0 : i32, i32
  }
  func.func @transform_12(%arg0: i32) -> (i32, i32) {
    %c0_i32 = arith.constant 0 : i32
    %c0_i32_0 = arith.constant 0 : i32
    return %arg0, %c0_i32 : i32, i32
  }
}

module attributes {stable_mosaic.version = 11 : i64} {
  func.func @attn_kernel(%arg0: i32, %arg1: memref<4x8x8xf32, #tpu.memory_space<vmem>>, %arg2: memref<4x8x8xf32, #tpu.memory_space<vmem>>, %arg3: memref<4x8x8xf32, #tpu.memory_space<vmem>>, %arg4: memref<4x8x8xf32, #tpu.memory_space<vmem>>) attributes {dimension_semantics = [#tpu.dimension_semantics<parallel>], iteration_bounds = array<i64: 2>, scalar_prefetch = 0 : i64, scratch_operands = 0 : i64, tpu.core_type = #tpu.core_type<tc>, window_params = [{transform_indices = @transform_0, window_bounds = array<i64: 4, 8, 8>}, {transform_indices = @transform_1, window_bounds = array<i64: 4, 8, 8>}, {transform_indices = @transform_2, window_bounds = array<i64: 4, 8, 8>}, {transform_indices = @transform_3, window_bounds = array<i64: 4, 8, 8>}]} {
    %c0 = arith.constant 0 : index
    %c0_0 = arith.constant 0 : index
    %c0_1 = arith.constant 0 : index
    %0 = vector.load %arg1[%c0, %c0_0, %c0_1] : memref<4x8x8xf32, #tpu.memory_space<vmem>>, vector<4x8x8xf32>
    %c0_2 = arith.constant 0 : index
    %c0_3 = arith.constant 0 : index
    %c0_4 = arith.constant 0 : index
    %1 = vector.load %arg2[%c0_2, %c0_3, %c0_4] : memref<4x8x8xf32, #tpu.memory_space<vmem>>, vector<4x8x8xf32>
    %c0_5 = arith.constant 0 : index
    %c0_6 = arith.constant 0 : index
    %c0_7 = arith.constant 0 : index
    %2 = vector.load %arg3[%c0_5, %c0_6, %c0_7] : memref<4x8x8xf32, #tpu.memory_space<vmem>>, vector<4x8x8xf32>
    "tpu.trace_start"() <{level = 10 : i32, message = "hqd,hkd->hqk"}> : () -> ()
    %cst = arith.constant dense<0.000000e+00> : vector<4x8x8xf32>
    %3 = tpu.matmul %0, %1, %cst {dimension_numbers = #tpu.dot_dimension_numbers<[2], [2], [1], [1], [0, 0, 0, 1, 1, 1], [0], [0]>} : vector<4x8x8xf32>, vector<4x8x8xf32>, vector<4x8x8xf32> -> vector<4x8x8xf32>
    "tpu.trace_stop"() : () -> ()
    %cst_8 = arith.constant 0.353553385 : f32
    %4 = vector.broadcast %cst_8 : f32 to vector<4x8x8xf32>
    %5 = arith.mulf %3, %4 : vector<4x8x8xf32>
    %cst_9 = arith.constant dense<0xFF800000> : vector<4x8xf32>
    %6 = vector.multi_reduction <maximumf>, %5, %cst_9 [2] : vector<4x8x8xf32> to vector<4x8xf32>
    %7 = vector.shape_cast %6 : vector<4x8xf32> to vector<4x8x1xf32>
    %8 = vector.broadcast %7 : vector<4x8x1xf32> to vector<4x8x8xf32>
    %9 = arith.subf %5, %8 : vector<4x8x8xf32>
    %10 = math.exp %9 : vector<4x8x8xf32>
    %cst_10 = arith.constant dense<0.000000e+00> : vector<4x8xf32>
    %11 = vector.multi_reduction <add>, %10, %cst_10 [2] : vector<4x8x8xf32> to vector<4x8xf32>
    %12 = vector.shape_cast %11 : vector<4x8xf32> to vector<4x8x1xf32>
    %13 = vector.broadcast %12 : vector<4x8x1xf32> to vector<4x8x8xf32>
    %14 = arith.divf %10, %13 : vector<4x8x8xf32>
    "tpu.trace_start"() <{level = 10 : i32, message = "hqk,hkd->hqd"}> : () -> ()
    %cst_11 = arith.constant dense<0.000000e+00> : vector<4x8x8xf32>
    %15 = tpu.matmul %14, %2, %cst_11 {dimension_numbers = #tpu.dot_dimension_numbers<[2], [1], [1], [2], [0, 0, 0, 1, 1, 2], [0], [0]>} : vector<4x8x8xf32>, vector<4x8x8xf32>, vector<4x8x8xf32> -> vector<4x8x8xf32>
    "tpu.trace_stop"() : () -> ()
    %c0_12 = arith.constant 0 : index
    %c0_13 = arith.constant 0 : index
    %c0_14 = arith.constant 0 : index
    %16 = vector.load %arg4[%c0_12, %c0_13, %c0_14] : memref<4x8x8xf32, #tpu.memory_space<vmem>>, vector<4x8x8xf32>
    tpu.vector_store %arg4[%c0_12, %c0_13, %c0_14], %15 {strides = array<i32>} : memref<4x8x8xf32, #tpu.memory_space<vmem>>, vector<4x8x8xf32>,
    return
  }
  func.func @transform_0(%arg0: i32) -> (i32, i32, i32) {
    %c0_i32 = arith.constant 0 : i32
    %c0_i32_0 = arith.constant 0 : i32
    %c0_i32_1 = arith.constant 0 : i32
    return %arg0, %c0_i32, %c0_i32_0 : i32, i32, i32
  }
  func.func @transform_1(%arg0: i32) -> (i32, i32, i32) {
    %c0_i32 = arith.constant 0 : i32
    %c0_i32_0 = arith.constant 0 : i32
    %c0_i32_1 = arith.constant 0 : i32
    return %arg0, %c0_i32, %c0_i32_0 : i32, i32, i32
  }
  func.func @transform_2(%arg0: i32) -> (i32, i32, i32) {
    %c0_i32 = arith.constant 0 : i32
    %c0_i32_0 = arith.constant 0 : i32
    %c0_i32_1 = arith.constant 0 : i32
    return %arg0, %c0_i32, %c0_i32_0 : i32, i32, i32
  }
  func.func @transform_3(%arg0: i32) -> (i32, i32, i32) {
    %c0_i32 = arith.constant 0 : i32
    %c0_i32_0 = arith.constant 0 : i32
    %c0_i32_1 = arith.constant 0 : i32
    return %arg0, %c0_i32, %c0_i32_0 : i32, i32, i32
  }
}

module attributes {stable_mosaic.version = 11 : i64} {
  func.func @head_kernel(%arg0: i32, %arg1: memref<2x256xf32, #tpu.memory_space<vmem>>, %arg2: memref<256x32xf32, #tpu.memory_space<vmem>>, %arg3: memref<1x32xf32, #tpu.memory_space<vmem>>, %arg4: memref<32x4xf32, #tpu.memory_space<vmem>>, %arg5: memref<1x4xf32, #tpu.memory_space<vmem>>, %arg6: memref<2x4xf32, #tpu.memory_space<vmem>>) attributes {dimension_semantics = [#tpu.dimension_semantics<arbitrary>], iteration_bounds = array<i64: 1>, scalar_prefetch = 0 : i64, scratch_operands = 0 : i64, tpu.core_type = #tpu.core_type<tc>, window_params = [{pipeline_mode = #tpu.pipeline_mode<synchronous>, transform_indices = @transform_0, window_bounds = array<i64: 2, 256>}, {pipeline_mode = #tpu.pipeline_mode<synchronous>, transform_indices = @transform_1, window_bounds = array<i64: 256, 32>}, {pipeline_mode = #tpu.pipeline_mode<synchronous>, transform_indices = @transform_2, window_bounds = array<i64: 1, 32>}, {pipeline_mode = #tpu.pipeline_mode<synchronous>, transform_indices = @transform_3, window_bounds = array<i64: 32, 4>}, {pipeline_mode = #tpu.pipeline_mode<synchronous>, transform_indices = @transform_4, window_bounds = array<i64: 1, 4>}, {pipeline_mode = #tpu.pipeline_mode<synchronous>, transform_indices = @transform_5, window_bounds = array<i64: 2, 4>}]} {
    %c0 = arith.constant 0 : index
    %c0_0 = arith.constant 0 : index
    %0 = vector.load %arg1[%c0, %c0_0] : memref<2x256xf32, #tpu.memory_space<vmem>>, vector<2x256xf32>
    %c0_1 = arith.constant 0 : index
    %c0_2 = arith.constant 0 : index
    %1 = vector.load %arg2[%c0_1, %c0_2] : memref<256x32xf32, #tpu.memory_space<vmem>>, vector<256x32xf32>
    %cst = arith.constant dense<0.000000e+00> : vector<2x32xf32>
    %2 = tpu.matmul %0, %1, %cst {dimension_numbers = #tpu.dot_dimension_numbers<[1], [0], [0], [1], [0, 0, 1, 1], [], []>} : vector<2x256xf32>, vector<256x32xf32>, vector<2x32xf32> -> vector<2x32xf32>
    %c0_3 = arith.constant 0 : index
    %c0_4 = arith.constant 0 : index
    %3 = vector.load %arg3[%c0_3, %c0_4] : memref<1x32xf32, #tpu.memory_space<vmem>>, vector<1x32xf32>
    %4 = vector.broadcast %3 : vector<1x32xf32> to vector<2x32xf32>
    %5 = arith.addf %2, %4 : vector<2x32xf32>
    %cst_5 = arith.constant 0.000000e+00 : f32
    %6 = vector.broadcast %cst_5 : f32 to vector<2x32xf32>
    %7 = arith.maximumf %5, %6 : vector<2x32xf32>
    %c0_6 = arith.constant 0 : index
    %c0_7 = arith.constant 0 : index
    %8 = vector.load %arg4[%c0_6, %c0_7] : memref<32x4xf32, #tpu.memory_space<vmem>>, vector<32x4xf32>
    %cst_8 = arith.constant dense<0.000000e+00> : vector<2x4xf32>
    %9 = tpu.matmul %7, %8, %cst_8 {dimension_numbers = #tpu.dot_dimension_numbers<[1], [0], [0], [1], [0, 0, 1, 1], [], []>} : vector<2x32xf32>, vector<32x4xf32>, vector<2x4xf32> -> vector<2x4xf32>
    %c0_9 = arith.constant 0 : index
    %c0_10 = arith.constant 0 : index
    %10 = vector.load %arg5[%c0_9, %c0_10] : memref<1x4xf32, #tpu.memory_space<vmem>>, vector<1x4xf32>
    %11 = vector.broadcast %10 : vector<1x4xf32> to vector<2x4xf32>
    %12 = arith.addf %9, %11 : vector<2x4xf32>
    %c0_11 = arith.constant 0 : index
    %c0_12 = arith.constant 0 : index
    %13 = vector.load %arg6[%c0_11, %c0_12] : memref<2x4xf32, #tpu.memory_space<vmem>>, vector<2x4xf32>
    tpu.vector_store %arg6[%c0_11, %c0_12], %12 {strides = array<i32>} : memref<2x4xf32, #tpu.memory_space<vmem>>, vector<2x4xf32>,
    return
  }
  func.func @transform_0(%arg0: i32) -> (i32, i32) {
    %c0_i32 = arith.constant 0 : i32
    %c0_i32_0 = arith.constant 0 : i32
    %c0_i32_1 = arith.constant 0 : i32
    return %c0_i32, %c0_i32_0 : i32, i32
  }
  func.func @transform_1(%arg0: i32) -> (i32, i32) {
    %c0_i32 = arith.constant 0 : i32
    %c0_i32_0 = arith.constant 0 : i32
    %c0_i32_1 = arith.constant 0 : i32
    return %c0_i32, %c0_i32_0 : i32, i32
  }
  func.func @transform_2(%arg0: i32) -> (i32, i32) {
    %c0_i32 = arith.constant 0 : i32
    %c0_i32_0 = arith.constant 0 : i32
    %c0_i32_1 = arith.constant 0 : i32
    return %c0_i32, %c0_i32_0 : i32, i32
  }
  func.func @transform_3(%arg0: i32) -> (i32, i32) {
    %c0_i32 = arith.constant 0 : i32
    %c0_i32_0 = arith.constant 0 : i32
    %c0_i32_1 = arith.constant 0 : i32
    return %c0_i32, %c0_i32_0 : i32, i32
  }
  func.func @transform_4(%arg0: i32) -> (i32, i32) {
    %c0_i32 = arith.constant 0 : i32
    %c0_i32_0 = arith.constant 0 : i32
    %c0_i32_1 = arith.constant 0 : i32
    return %c0_i32, %c0_i32_0 : i32, i32
  }
  func.func @transform_5(%arg0: i32) -> (i32, i32) {
    %c0_i32 = arith.constant 0 : i32
    %c0_i32_0 = arith.constant 0 : i32
    %c0_i32_1 = arith.constant 0 : i32
    return %c0_i32, %c0_i32_0 : i32, i32
  }
}

</mosaic_0001>

<bundles_post_ra>
// kernel: tcnn1d_forward.11
= control target key start
LH: loop header
LB: loop body
LE: loop exit
PB: predicated region body
PF: predicated region fallthrough
CT: control target
= control target key end

     0   :  { %s966_s21 = smov 0   ;;  %s1074_s0 = inlined_call_operand.vmem [shape: f32[16,32], index: 0, kind: input, shape index: {}]   ;;  %s1075_s1 = inlined_call_operand.vmem [shape: f32[16,32], index: 1, kind: input, shape index: {}]   ;;  %s1076_s2 = inlined_call_operand.vmem [shape: f32[32,32], index: 2, kind: input, shape index: {}]   ;;  %s1077_s3 = inlined_call_operand.vmem [shape: f32[1,32], index: 3, kind: input, shape index: {}]   ;;  %s1078_s4 = inlined_call_operand.vmem [shape: f32[1,32], index: 4, kind: input, shape index: {}]   ;;  %s1079_s5 = inlined_call_operand.vmem [shape: f32[1,32], index: 5, kind: input, shape index: {}]   ;;  %s1080_s6 = inlined_call_operand.vmem [shape: f32[32,32], index: 6, kind: input, shape index: {}]   ;;  %s1081_s7 = inlined_call_operand.vmem [shape: f32[1,32], index: 7, kind: input, shape index: {}]   ;;  %s1082_s8 = inlined_call_operand.vmem [shape: f32[32,32], index: 8, kind: input, shape index: {}]   ;;  %s1083_s9 = inlined_call_operand.vmem [shape: f32[1,32], index: 9, kind: input, shape index: {}]   ;;  %s1084_s10 = inlined_call_operand.vmem [shape: f32[1,32], index: 10, kind: input, shape index: {}]   ;;  %s1085_s11 = inlined_call_operand.vmem [shape: f32[1,32], index: 11, kind: input, shape index: {}]   ;;  %s1086_s12 = inlined_call_operand.vmem [shape: f32[16,32], index: 12, kind: output, shape index: {}]  }
   0x1 LB: > { %s809_s22 = sadd.s32 4294967295, %s897_s21   ;;  %p813_p0 = scmp.ge.s32.totalorder %s897_s21, 1  ;;  %s897_s21 = sphi %s966_s21, %s22_s21  }
   0x2   : > { %p370_p1 = scmp.lt.s32.totalorder %s897_s21, 3 }
   0x4   : > { %p371_p2 = pnand %p813_p0, %p370_p1 }
   0x5   : > { %p414_p3 = scmp.lt.s32.totalorder (!%p371_p2), %s809_s22, 1 }
   0x6   : > { %374 = sbr.rel (%p371_p2) target bundleno = 1228 (0x4cc), region = 68 }
   0xb   : > { %v431_v0 = vld [vmem:[%s1076_s2 + $0x18] sm:$0xff]  ;;  %v899_v1 = vmov 0.0   ;;  %v430_v2 = vld [vmem:[%s1076_s2 + $0x10] sm:$0xff]  ;;  %vm900_vm0 = vmmov 0   ;;  %s1088_s22 = smov (!%p414_p3, %s809_s22), 1  ;;  %v429_v3 = vld [vmem:[%s1076_s2 + $0x8] sm:$0xff] }
   0xc   : > { %844 = vmatprep.subr.mxu0 %v899_v1  ;;  %852 = vmatprep.mubr.msk.f32.mxu0 %vm900_vm0, %v899_v1  ;;  %s990_s29 = sshll.u32 %s1088_s22, 3  ;;  %v428_v4 = vld [vmem:[%s1076_s2] sm:$0xff]  ;;  %vm439_vm1 = vcmask 261120   ;;  %v547_v18 = vld [vmem:[%s1080_s6 + $0x18] sm:$0xff]  ;;  %v546_v19 = vld [vmem:[%s1080_s6 + $0x10] sm:$0xff] }
   0xd   : > { %845 = vmatpush3.msra.mxu0 %v431_v0  ;;  %855 = vmatprep.subr.mxu1 %v899_v1  ;;  %s417_s16 = scalar_lea.vmem %s1074_s0, %s990_s29  ;;  %s421_s19 = scalar_lea.vmem %s1075_s1, %s990_s29  ;;  %v817_v6 = vld [vmem:[%s1077_s3] ss:$0 sm:$0xff]  ;;  %v545_v20 = vld [vmem:[%s1080_s6 + $0x8] sm:$0xff]  ;;  %v632_v22 = vld [vmem:[%s1082_s8 + $0x18] sm:$0xff] }
   0xe   : > { %846 = vmatprep.subr.mxu0 %v899_v1  ;;  %863 = vmatprep.mubr.msk.f32.mxu1 %vm900_vm0, %v899_v1  ;;  %v427_v5 = vld [vmem:[%s417_s16] sm:$0xff]  ;;  %v631_v32 = vld [vmem:[%s1082_s8 + $0x10] sm:$0xff]  ;;  %v630_v33 = vld [vmem:[%s1082_s8 + $0x8] sm:$0xff]  ;;  %s425_s20 = scalar_lea.vmem %s1086_s12, %s990_s29 }
   0xf   : > { %847 = vmatpush3.msra.mxu0 %v430_v2  ;;  %v426_v8 = vld [vmem:[%s421_s19] sm:$0xff]  ;;  %856 = vmatpush3.msra.mxu1 %v547_v18 }
  0x10   : > { %848 = vmatprep.subr.mxu0 %v899_v1  ;;  %857 = vmatprep.subr.mxu1 %v899_v1  ;;  %v544_v21 = vld [vmem:[%s1080_s6] sm:$0xff] }
  0x11   : > { %849 = vmatpush3.msra.mxu0 %v429_v3  ;;  %858 = vmatpush3.msra.mxu1 %v546_v19  ;;  %v819_v27 = vld [vmem:[%s1078_s4] ss:$0 sm:$0xff] }
  0x12   : > { %850 = vmatprep.subr.mxu0 %v899_v1  ;;  %859 = vmatprep.subr.mxu1 %v899_v1  ;;  %v820_v29 = vld [vmem:[%s1079_s5] ss:$0 sm:$0xff] }
  0x13   : > { %851 = vmatpush3.msra.mxu0 %v428_v4  ;;  %860 = vmatpush3.msra.mxu1 %v545_v20  ;;  %v629_v34 = vld [vmem:[%s1082_s8] sm:$0xff] }
  0x14   : > { %853 = vmatmul.mubr.msk.f32.vlgmr.msra.gmra.mxu0 %vm439_vm1, %v427_v5  ;;  %866 = vmatprep.subr.mxu0 %v899_v1  ;;  %v821_v35 = vld [vmem:[%s1081_s7] ss:$0 sm:$0xff] }
  0x15   : > { %874 = vmatprep.mubr.msk.f32.mxu0 %vm900_vm0, %v899_v1  ;;  %861 = vmatprep.subr.mxu1 %v899_v1  ;;  %v823_v40 = vld [vmem:[%s1083_s9] ss:$0 sm:$0xff] }
  0x16   : > { %862 = vmatpush3.msra.mxu1 %v544_v21  ;;  %867 = vmatpush3.msra.mxu0 %v632_v22  ;;  %v825_v55 = vld [vmem:[%s1084_s10] ss:$0 sm:$0xff] }
  0x17   : > { %868 = vmatprep.subr.mxu0 %v899_v1  ;;  %v826_v57 = vld [vmem:[%s1085_s11] ss:$0 sm:$0xff] }
  0x18   : > { %869 = vmatpush3.msra.mxu0 %v631_v32 }
  0x19   : > { %870 = vmatprep.subr.mxu0 %v899_v1 }
  0x1a   : > { %871 = vmatpush3.msra.mxu0 %v630_v33 }
  0x1b   : > { %872 = vmatprep.subr.mxu0 %v899_v1 }
  0x1c   : > { %873 = vmatpush3.msra.mxu0 %v629_v34 }
  0xd4   : > { %v509_v7 = vpop.f32.mrf.mxu0 }
  0xd5   : > { %v510_v9 = vadd.f32 %v817_v6, %v509_v7 }
  0xd6   : > { %v854_v10 = vpop.f32.mrf.mxu0 }
  0xd7   : > { %v513_v11 = vadd.f32 %v510_v9, %v426_v8 }
  0xd9   : > { %v516_v12 = vsel %vm439_vm1, %v513_v11, 0.0 }
  0xda   : > { %517 = vadd.xlane.f32.xlu0 %v516_v12 }
 0x163   : > { %v518_v13 = vpop.xlane.xlu0 %517 }
 0x164   : > { %v520_v14 = vmul.f32 0.03125, %v518_v13 }
 0x166   : > { %v521_v15 = vsub.f32 %v513_v11, %v520_v14 }
 0x168   : > { %v522_v16 = vmul.f32 %v521_v15, %v521_v15 }
 0x16a   : > { %v523_v17 = vsel %vm439_vm1, %v522_v16, 0.0 }
 0x16b   : > { %524 = vadd.xlane.f32.xlu0 %v523_v17 }
 0x1f4   : > { %v525_v23 = vpop.xlane.xlu0 %524 }
 0x1f5   : > { %v526_v24 = vmul.f32 0.03125, %v525_v23 }
 0x1f7   : > { %v527_v25 = vadd.f32 1e-05, %v526_v24 }
 0x1f9   : > { %887 = vrsqrt.f32 %v527_v25 }
 0x206   : > { %v888_v26 = vpop.eup %887 }
 0x207   : > { %v529_v28 = vmul.f32 %v888_v26, %v521_v15 }
 0x209   : > { %v536_v30 = vmul.f32 %v819_v27, %v529_v28 }
 0x20b   : > { %v543_v31 = vadd.f32 %v820_v29, %v536_v30 }
 0x20d   : > { %864 = vmatmul.mubr.msk.f32.vlgmr.msra.gmra.mxu1 %vm439_vm1, %v543_v31 }
 0x2cd   : > { %v624_v36 = vpop.f32.mrf.mxu1 }
 0x2ce   : > { %v625_v37 = vadd.f32 %v821_v35, %v624_v36 }
 0x2cf   : > { %v865_v38 = vpop.f32.mrf.mxu1 }
 0x2d0   : > { %v628_v39 = vmax.f32 %v625_v37, 0.0 }
 0x2d2   : > { %875 = vmatmul.mubr.msk.f32.vlgmr.msra.gmra.mxu0 %vm439_vm1, %v628_v39 }
 0x392   : > { %v709_v41 = vpop.f32.mrf.mxu0 }
 0x393   : > { %v710_v42 = vadd.f32 %v823_v40, %v709_v41 }
 0x394   : > { %v876_v43 = vpop.f32.mrf.mxu0 }
 0x395   : > { %v713_v44 = vadd.f32 %v710_v42, %v543_v31 }
 0x397   : > { %v716_v45 = vsel %vm439_vm1, %v713_v44, 0.0 }
 0x398   : > { %717 = vadd.xlane.f32.xlu1 %v716_v45 }
 0x421   : > { %v718_v46 = vpop.xlane.xlu1 %717 }
 0x422   : > { %v719_v47 = vmul.f32 0.03125, %v718_v46 }
 0x424   : > { %v720_v48 = vsub.f32 %v713_v44, %v719_v47 }
 0x426   : > { %v721_v49 = vmul.f32 %v720_v48, %v720_v48 }
 0x428   : > { %v722_v50 = vsel %vm439_vm1, %v721_v49, 0.0 }
 0x429   : > { %723 = vadd.xlane.f32.xlu1 %v722_v50 }
 0x4b2   : > { %v724_v51 = vpop.xlane.xlu1 %723 }
 0x4b3   : > { %v725_v52 = vmul.f32 0.03125, %v724_v51 }
 0x4b5   : > { %v726_v53 = vadd.f32 1e-05, %v725_v52 }
 0x4b7   : > { %889 = vrsqrt.f32 %v726_v53 }
 0x4c4   : > { %v890_v54 = vpop.eup %889 }
 0x4c5   : > { %v728_v56 = vmul.f32 %v890_v54, %v720_v48 }
 0x4c7   : > { %v735_v58 = vmul.f32 %v825_v55, %v728_v56 }
 0x4c9   : > { %v742_v59 = vadd.f32 %v826_v57, %v735_v58 }
 0x4cb   : > { %743 = vst.msk [vmem:[%s425_s20] sm:$0xff] %vm439_vm1, %v742_v59 }
 0x4cc PF: > { %s22_s21 = sadd.s32 1, %s897_s21  }
 0x4cd   : > { %p19_p4 = scmp.ge.s32.totalorder %s22_s21, 4  }
 0x4cf   :  { %21 = sbr.rel (!%p19_p4) target bundleno = 1 (0x1), region = 101 }

// kernel: tcnn1d_forward.8
= control target key start
LH: loop header
LB: loop body
LE: loop exit
PB: predicated region body
PF: predicated region fallthrough
CT: control target
= control target key end

     0   :  { %s400_s15 = smov 0   ;;  %s429_s0 = inlined_call_operand.vmem [shape: f32[16,16], index: 0, kind: input, shape index: {}]   ;;  %s430_s1 = inlined_call_operand.vmem [shape: f32[16,32], index: 1, kind: input, shape index: {}]   ;;  %s431_s2 = inlined_call_operand.vmem [shape: f32[1,32], index: 2, kind: input, shape index: {}]   ;;  %s432_s3 = inlined_call_operand.vmem [shape: f32[8,32], index: 3, kind: input, shape index: {}]   ;;  %s433_s4 = inlined_call_operand.vmem [shape: f32[16,32], index: 4, kind: output, shape index: {}]  }
   0x1 LB: > { %s334_s16 = sadd.s32 4294967295, %s371_s15   ;;  %p338_p0 = scmp.ge.s32.totalorder %s371_s15, 1  ;;  %s371_s15 = sphi %s400_s15, %s14_s15  }
   0x2   : > { %p161_p1 = scmp.lt.s32.totalorder %s371_s15, 3 }
   0x4   : > { %p162_p2 = pnand %p338_p0, %p161_p1 }
   0x5   : > { %p185_p3 = scmp.lt.s32.totalorder (!%p162_p2), %s334_s16, 1 }
   0x6   : > { %165 = sbr.rel (%p162_p2) target bundleno = 214 (0xd6), region = 36 }
   0xb   : > { %v195_v0 = vld [vmem:[%s430_s1 + $0x8] sm:$0xff]  ;;  %v373_v1 = vmov 0.0   ;;  %v194_v2 = vld [vmem:[%s430_s1] sm:$0xff]  ;;  %vm374_vm0 = vmmov 0   ;;  %s435_s16 = smov (!%p185_p3, %s334_s16), 1  ;;  %vm203_vm1 = vcmask 130048  }
   0xc   : > { %348 = vmatprep.subr.mxu0 %v373_v1  ;;  %352 = vmatprep.mubr.msk.f32.mxu0 %vm374_vm0, %v373_v1  ;;  %s339_s21 = sshll.u32 %s435_s16, 3  ;;  %v341_v4 = vld [vmem:[%s431_s2] ss:$0 sm:$0xff]  ;;  %vm279_vm2 = vcmask 261120  }
   0xd   : > { %349 = vmatpush3.msra.mxu0 %v195_v0  ;;  %s188_s24 = scalar_lea.vmem %s429_s0, %s339_s21  ;;  %v277_v6 = vld [vmem:[%s432_s3] sm:$0xff]  ;;  %s192_s5 = scalar_lea.vmem %s433_s4, %s339_s21 }
   0xe   : > { %350 = vmatprep.subr.mxu0 %v373_v1  ;;  %v193_v3 = vld [vmem:[%s188_s24] sm:$0xff] }
   0xf   : > { %351 = vmatpush3.msra.mxu0 %v194_v2 }
  0x10   : > { %353 = vmatmul.mubr.msk.f32.vlgmr.msra.gmra.mxu0 %vm203_vm1, %v193_v3 }
  0xd0   : > { %v273_v5 = vpop.f32.mrf.mxu0 }
  0xd1   : > { %v274_v7 = vadd.f32 %v341_v4, %v273_v5 }
  0xd2   : > { %v354_v8 = vpop.f32.mrf.mxu0 }
  0xd3   : > { %v278_v9 = vadd.f32 %v277_v6, %v274_v7 }
  0xd5   : > { %280 = vst.msk [vmem:[%s192_s5] sm:$0xff] %vm279_vm2, %v278_v9 }
  0xd6 PF: > { %s14_s15 = sadd.s32 1, %s371_s15  }
  0xd7   : > { %p11_p4 = scmp.ge.s32.totalorder %s14_s15, 4  }
  0xd9   :  { %13 = sbr.rel (!%p11_p4) target bundleno = 1 (0x1), region = 66 }

// kernel: tcnn1d_forward.9
= control target key start
LH: loop header
LB: loop body
LE: loop exit
PB: predicated region body
PF: predicated region fallthrough
CT: control target
= control target key end

     0   :  { %s374_s12 = smov 0   ;;  %s406_s0 = inlined_call_operand.vmem [shape: f32[16,32], index: 0, kind: input, shape index: {}]   ;;  %s407_s1 = inlined_call_operand.vmem [shape: f32[32,96], index: 1, kind: input, shape index: {}]   ;;  %s408_s2 = inlined_call_operand.vmem [shape: f32[1,96], index: 2, kind: input, shape index: {}]   ;;  %s409_s3 = inlined_call_operand.vmem [shape: f32[16,96], index: 3, kind: output, shape index: {}]  }
   0x1 LB: > { %s307_s13 = sadd.s32 4294967295, %s350_s12   ;;  %p311_p0 = scmp.ge.s32.totalorder %s350_s12, 1  ;;  %s350_s12 = sphi %s374_s12, %s13_s12  }
   0x2   : > { %p136_p1 = scmp.lt.s32.totalorder %s350_s12, 3 }
   0x4   : > { %p137_p2 = pnand %p311_p0, %p136_p1 }
   0x5   : > { %p158_p3 = scmp.lt.s32.totalorder (!%p137_p2), %s307_s13, 1 }
   0x6   : > { %140 = sbr.rel (%p137_p2) target bundleno = 216 (0xd8), region = 32 }
   0xb   : > { %v170_v0 = vld [vmem:[%s407_s1 + $0x18] sm:$0xff]  ;;  %v352_v1 = vmov 0.0   ;;  %v169_v2 = vld [vmem:[%s407_s1 + $0x10] sm:$0xff]  ;;  %vm353_vm0 = vmmov 0   ;;  %s411_s13 = smov (!%p158_p3, %s307_s13), 1  ;;  %v168_v3 = vld [vmem:[%s407_s1 + $0x8] sm:$0xff] }
   0xc   : > { %323 = vmatprep.subr.mxu0 %v352_v1  ;;  %331 = vmatprep.mubr.msk.f32.mxu0 %vm353_vm0, %v352_v1  ;;  %s312_s20 = sshll.u32 %s411_s13, 3  ;;  %v167_v4 = vld [vmem:[%s407_s1] sm:$0xff]  ;;  %vm178_vm1 = vcmask 261120   ;;  %vm252_vm2 = vcmask 785408  }
   0xd   : > { %324 = vmatpush3.msra.mxu0 %v170_v0  ;;  %s161_s25 = scalar_lea.vmem %s406_s0, %s312_s20  ;;  %v314_v6 = vld [vmem:[%s408_s2] ss:$0 sm:$0xff]  ;;  %s165_s30 = scalar_lea.vmem %s409_s3, %s312_s20 }
   0xe   : > { %325 = vmatprep.subr.mxu0 %v352_v1  ;;  %v166_v5 = vld [vmem:[%s161_s25] sm:$0xff] }
   0xf   : > { %326 = vmatpush3.msra.mxu0 %v169_v2 }
  0x10   : > { %327 = vmatprep.subr.mxu0 %v352_v1 }
  0x11   : > { %328 = vmatpush3.msra.mxu0 %v168_v3 }
  0x12   : > { %329 = vmatprep.subr.mxu0 %v352_v1 }
  0x13   : > { %330 = vmatpush3.msra.mxu0 %v167_v4 }
  0x14   : > { %332 = vmatmul.mubr.msk.f32.vlgmr.msra.gmra.mxu0 %vm178_vm1, %v166_v5 }
  0xd4   : > { %v248_v7 = vpop.f32.mrf.mxu0 }
  0xd5   : > { %v249_v8 = vadd.f32 %v314_v6, %v248_v7 }
  0xd6   : > { %v333_v9 = vpop.f32.mrf.mxu0 }
  0xd7   : > { %253 = vst.msk [vmem:[%s165_s30] sm:$0xff] %vm252_vm2, %v249_v8 }
  0xd8 PF: > { %s13_s12 = sadd.s32 1, %s350_s12  }
  0xd9   : > { %p10_p4 = scmp.ge.s32.totalorder %s13_s12, 4  }
  0xdb   :  { %12 = sbr.rel (!%p10_p4) target bundleno = 1 (0x1), region = 62 }

// kernel: tcnn1d_forward.10
= control target key start
LH: loop header
LB: loop body
LE: loop exit
PB: predicated region body
PF: predicated region fallthrough
CT: control target
= control target key end

     0   :  { %s1098_s12 = smov 0   ;;  %s1175_s0 = inlined_call_operand.vmem [shape: f32[8,8,8], index: 0, kind: input, shape index: {}]   ;;  %s1176_s1 = inlined_call_operand.vmem [shape: f32[8,8,8], index: 1, kind: input, shape index: {}]   ;;  %s1177_s2 = inlined_call_operand.vmem [shape: f32[8,8,8], index: 2, kind: input, shape index: {}]   ;;  %s1178_s3 = inlined_call_operand.vmem [shape: f32[8,8,8], index: 3, kind: output, shape index: {}]  }
   0x1 LB: > { %s959_s13 = sadd.s32 4294967295, %s1074_s12   ;;  %p963_p0 = scmp.ge.s32.totalorder %s1074_s12, 1  ;;  %s1074_s12 = sphi %s1098_s12, %s13_s12  }
   0x2   : > { %p160_p1 = scmp.lt.s32.totalorder %s1074_s12, 3 }
   0x4   : > { %p161_p2 = pnand %p963_p0, %p160_p1 }
   0x5   : > { %s964_s14 = sshll.u32 (!%p161_p2), %s959_s13, 2 }
   0x6   : > { %164 = sbr.rel (%p161_p2) target bundleno = 728 (0x2d8), region = 32  ;;  %p195_p3 = scmp.lt.s32.totalorder (!%p161_p2), %s964_s14, 7 }
   0xb   : > { %v1076_v0 = vmov 0.0   ;;  %vm1077_vm0 = vmmov 0   ;;  %s1180_s14 = smov (!%p195_p3, %s964_s14), 7  ;;  %vm230_vm1 = vcmask 64512  }
   0xc   : > { %1002 = vmatprep.subr.mxu0 %v1076_v0  ;;  %1004 = vmatprep.mubr.msk.f32.mxu0 %vm1077_vm0, %v1076_v0  ;;  %s1112_s15 = sshll.u32 %s1180_s14, 3 }
   0xd   : > { %1007 = vmatprep.subr.mxu1 %v1076_v0  ;;  %1009 = vmatprep.mubr.msk.f32.mxu1 %vm1077_vm0, %v1076_v0  ;;  %s204_s18 = scalar_lea.vmem %s1176_s1, %s1112_s15  ;;  %s198_s21 = scalar_lea.vmem %s1175_s0, %s1112_s15 }
   0xe   : > { %v222_v1 = vld [vmem:[%s204_s18] sm:$0xff]  ;;  %v223_v2 = vld [vmem:[%s204_s18 + $0x8] sm:$0xff]  ;;  %v224_v5 = vld [vmem:[%s204_s18 + $0x10] sm:$0xff]  ;;  %s210_s24 = scalar_lea.vmem %s1177_s2, %s1112_s15  ;;  %s216_s27 = scalar_lea.vmem %s1178_s3, %s1112_s15 }
   0xf   : > { %1003 = vmatpush3.xpose.msk.msra.mxu0 %vm230_vm1, %v222_v1  ;;  %v218_v3 = vld [vmem:[%s198_s21] sm:$0xff]  ;;  %1008 = vmatpush3.xpose.msk.msra.mxu1 %vm230_vm1, %v223_v2  ;;  %v219_v4 = vld [vmem:[%s198_s21 + $0x8] sm:$0xff]  ;;  %v225_v6 = vld [vmem:[%s204_s18 + $0x18] sm:$0xff] }
  0x10   : > { %1012 = vmatprep.subr.mxu0 %v1076_v0  ;;  %1017 = vmatprep.subr.mxu1 %v1076_v0  ;;  %v220_v7 = vld [vmem:[%s198_s21 + $0x10] sm:$0xff]  ;;  %v221_v8 = vld [vmem:[%s198_s21 + $0x18] sm:$0xff]  ;;  %v226_v45 = vld [vmem:[%s210_s24] sm:$0xff] }
  0x11   : > { %v227_v46 = vld [vmem:[%s210_s24 + $0x8] sm:$0xff]  ;;  %v228_v53 = vld [vmem:[%s210_s24 + $0x10] sm:$0xff]  ;;  %v229_v57 = vld [vmem:[%s210_s24 + $0x18] sm:$0xff] }
  0x12   : > { %1005 = vmatmul.mubr.msk.f32.vlgmr.msra.gmra.mxu0 %vm230_vm1, %v218_v3  ;;  %1010 = vmatmul.mubr.msk.f32.vlgmr.msra.gmra.mxu1 %vm230_vm1, %v219_v4 }
  0x13   : > { %1013 = vmatpush3.xpose.msk.msra.mxu0 %vm230_vm1, %v224_v5  ;;  %1014 = vmatprep.mubr.msk.f32.mxu0 %vm1077_vm0, %v1076_v0 }
  0x14   : > { %1018 = vmatpush3.xpose.msk.msra.mxu1 %vm230_vm1, %v225_v6  ;;  %1019 = vmatprep.mubr.msk.f32.mxu1 %vm1077_vm0, %v1076_v0 }
  0x15   : > { %1022 = vmatprep.subr.mxu0 %v1076_v0  ;;  %1027 = vmatprep.subr.mxu1 %v1076_v0 }
  0x16   : > { %1015 = vmatmul.mubr.msk.f32.vlgmr.msra.gmra.mxu0 %vm230_vm1, %v220_v7 }
  0x17   : > { %1020 = vmatmul.mubr.msk.f32.vlgmr.msra.gmra.mxu1 %vm230_vm1, %v221_v8  ;;  %1024 = vmatprep.mubr.msk.f32.mxu0 %vm1077_vm0, %v1076_v0 }
  0x18   : > { %1029 = vmatprep.mubr.msk.f32.mxu1 %vm1077_vm0, %v1076_v0  ;;  %1023 = vmatpush3.msra.mxu0 %v226_v45 }
  0x19   : > { %1032 = vmatprep.subr.mxu0 %v1076_v0  ;;  %1028 = vmatpush3.msra.mxu1 %v227_v46 }
  0x1a   : > { %1037 = vmatprep.subr.mxu1 %v1076_v0 }
  0xd2   : > { %v303_v9 = vpop.f32.mrf.mxu0  ;;  %v379_v10 = vpop.f32.mrf.mxu1 }
  0xd3   : > { %v535_v11 = vmul.f32 0.35355338, %v303_v9  ;;  %v536_v12 = vmul.f32 0.35355338, %v379_v10 }
  0xd4   : > { %v1006_v13 = vpop.f32.mrf.mxu0  ;;  %v1011_v14 = vpop.f32.mrf.mxu1 }
  0xd5   : > { %v539_v15 = vsel %vm230_vm1, %v535_v11, -inf  ;;  %v542_v19 = vsel %vm230_vm1, %v536_v12, -inf }
  0xd6   : > { %540 = vmax.xlane.f32.xlu0 %v539_v15  ;;  %v455_v16 = vpop.f32.mrf.mxu0 }
  0xd7   : > { %v537_v17 = vmul.f32 0.35355338, %v455_v16  ;;  %v531_v18 = vpop.f32.mrf.mxu1 }
  0xd8   : > { %v1016_v20 = vpop.f32.mrf.mxu0  ;;  %v538_v21 = vmul.f32 0.35355338, %v531_v18 }
  0xd9   : > { %v545_v22 = vsel %vm230_vm1, %v537_v17, -inf  ;;  %v1021_v23 = vpop.f32.mrf.mxu1 }
  0xda   : > { %543 = vmax.xlane.f32.xlu0 %v542_v19  ;;  %546 = vmax.xlane.f32.xlu1 %v545_v22  ;;  %v548_v24 = vsel %vm230_vm1, %v538_v21, -inf }
  0xde   : > { %549 = vmax.xlane.f32.xlu1 %v548_v24 }
 0x15f   : > { %v541_v25 = vpop.xlane.xlu0 %540 }
 0x160   : > { %v551_v26 = vsub.f32 %v535_v11, %v541_v25 }
 0x162   : > { %v555_v27 = vmul.f32 1.442695, %v551_v26 }
 0x163   : > { %v544_v28 = vpop.xlane.xlu0 %543  ;;  %v547_v29 = vpop.xlane.xlu1 %546 }
 0x164   : > { %1052 = vpow2.f32 %v555_v27  ;;  %v552_v30 = vsub.f32 %v536_v12, %v544_v28  ;;  %v553_v31 = vsub.f32 %v537_v17, %v547_v29 }
 0x166   : > { %v557_v32 = vmul.f32 1.442695, %v552_v30  ;;  %v559_v33 = vmul.f32 1.442695, %v553_v31 }
 0x167   : > { %v550_v34 = vpop.xlane.xlu1 %549 }
 0x168   : > { %1054 = vpow2.f32 %v557_v32  ;;  %v554_v35 = vsub.f32 %v538_v21, %v550_v34 }
 0x169   : > { %1056 = vpow2.f32 %v559_v33 }
 0x16a   : > { %v561_v36 = vmul.f32 1.442695, %v554_v35 }
 0x16c   : > { %1058 = vpow2.f32 %v561_v36 }
 0x171   : > { %v1053_v37 = vpop.eup %1052 }
 0x172   : > { %v563_v38 = vsel %vm230_vm1, %v1053_v37, 0.0 }
 0x173   : > { %564 = vadd.xlane.f32.xlu0 %v563_v38 }
 0x175   : > { %v1055_v39 = vpop.eup %1054 }
 0x176   : > { %v1057_v40 = vpop.eup %1056  ;;  %v566_v41 = vsel %vm230_vm1, %v1055_v39, 0.0 }
 0x177   : > { %567 = vadd.xlane.f32.xlu1 %v566_v41  ;;  %v569_v42 = vsel %vm230_vm1, %v1057_v40, 0.0 }
 0x178   : > { %570 = vadd.xlane.f32.xlu0 %v569_v42 }
 0x179   : > { %v1059_v43 = vpop.eup %1058 }
 0x17a   : > { %v572_v44 = vsel %vm230_vm1, %v1059_v43, 0.0 }
 0x17b   : > { %573 = vadd.xlane.f32.xlu1 %v572_v44 }
 0x1fc   : > { %v565_v47 = vpop.xlane.xlu0 %564 }
 0x1fd   : > { %1060 = vrcp.f32 %v565_v47 }
 0x200   : > { %v568_v48 = vpop.xlane.xlu1 %567 }
 0x201   : > { %v571_v49 = vpop.xlane.xlu0 %570  ;;  %1062 = vrcp.f32 %v568_v48 }
 0x202   : > { %1064 = vrcp.f32 %v571_v49 }
 0x204   : > { %v574_v50 = vpop.xlane.xlu1 %573 }
 0x205   : > { %1066 = vrcp.f32 %v574_v50 }
 0x20a   : > { %v1061_v51 = vpop.eup %1060 }
 0x20b   : > { %v576_v52 = vmul.f32 %v1061_v51, %v1053_v37 }
 0x20d   : > { %1025 = vmatmul.mubr.msk.f32.vlgmr.msra.gmra.mxu0 %vm230_vm1, %v576_v52 }
 0x20e   : > { %v1063_v54 = vpop.eup %1062  ;;  %1033 = vmatpush3.msra.mxu0 %v228_v53  ;;  %1034 = vmatprep.mubr.msk.f32.mxu0 %vm1077_vm0, %v1076_v0 }
 0x20f   : > { %v1065_v55 = vpop.eup %1064  ;;  %v578_v56 = vmul.f32 %v1063_v54, %v1055_v39 }
 0x210   : > { %v580_v58 = vmul.f32 %v1065_v55, %v1057_v40 }
 0x211   : > { %1030 = vmatmul.mubr.msk.f32.vlgmr.msra.gmra.mxu1 %vm230_vm1, %v578_v56 }
 0x212   : > { %v1067_v59 = vpop.eup %1066  ;;  %1035 = vmatmul.mubr.msk.f32.vlgmr.msra.gmra.mxu0 %vm230_vm1, %v580_v58  ;;  %1038 = vmatpush3.msra.mxu1 %v229_v57 }
 0x213   : > { %1039 = vmatprep.mubr.msk.f32.mxu1 %vm1077_vm0, %v1076_v0  ;;  %v582_v60 = vmul.f32 %v1067_v59, %v1059_v43 }
 0x215   : > { %1040 = vmatmul.mubr.msk.f32.vlgmr.msra.gmra.mxu1 %vm230_vm1, %v582_v60 }
 0x2cd   : > { %v652_v61 = vpop.f32.mrf.mxu0 }
 0x2ce   : > { %875 = vst.msk [vmem:[%s216_s27] sm:$0xff] %vm230_vm1, %v652_v61 }
 0x2cf   : > { %v1026_v62 = vpop.f32.mrf.mxu0 }
 0x2d1   : > { %v725_v63 = vpop.f32.mrf.mxu1 }
 0x2d2   : > { %876 = vst.msk [vmem:[%s216_s27 + $0x8] sm:$0xff] %vm230_vm1, %v725_v63  ;;  %v798_v1 = vpop.f32.mrf.mxu0 }
 0x2d3   : > { %877 = vst.msk [vmem:[%s216_s27 + $0x10] sm:$0xff] %vm230_vm1, %v798_v1  ;;  %v1031_v2 = vpop.f32.mrf.mxu1 }
 0x2d4   : > { %v1036_v3 = vpop.f32.mrf.mxu0 }
 0x2d5   : > { %v871_v0 = vpop.f32.mrf.mxu1 }
 0x2d6   : > { %878 = vst.msk [vmem:[%s216_s27 + $0x18] sm:$0xff] %vm230_vm1, %v871_v0 }
 0x2d7   : > { %v1041_v4 = vpop.f32.mrf.mxu1 }
 0x2d8 PF: > { %s13_s12 = sadd.s32 1, %s1074_s12  }
 0x2d9   : > { %p10_p4 = scmp.ge.s32.totalorder %s13_s12, 4  }
 0x2db   :  { %12 = sbr.rel (!%p10_p4) target bundleno = 1 (0x1), region = 68 }

// kernel: tcnn1d_forward.15
= control target key start
LH: loop header
LB: loop body
LE: loop exit
PB: predicated region body
PF: predicated region fallthrough
CT: control target
= control target key end

     0   :  { %s477_s0 = inlined_call_operand.vmem [shape: f32[2,256], index: 0, kind: input, shape index: {}]   ;;  %s478_s1 = inlined_call_operand.vmem [shape: f32[256,32], index: 1, kind: input, shape index: {}]   ;;  %s479_s2 = inlined_call_operand.vmem [shape: f32[1,32], index: 2, kind: input, shape index: {}]   ;;  %s480_s3 = inlined_call_operand.vmem [shape: f32[32,4], index: 3, kind: input, shape index: {}]   ;;  %s481_s4 = inlined_call_operand.vmem [shape: f32[1,4], index: 4, kind: input, shape index: {}]   ;;  %s482_s5 = inlined_call_operand.hbm [shape: f32[2,4], index: 5, kind: output, shape index: {}]  }
   0x1   :  { %v53_v0 = vld [vmem:[%s478_s1 + $0xf8] sm:$0xff]  ;;  %v52_v2 = vld [vmem:[%s478_s1 + $0xf0] sm:$0xff]  ;;  %v51_v4 = vld [vmem:[%s478_s1 + $0xe8] sm:$0xff] }
   0x2   :  { %v37_v1 = vld [vmem:[%s478_s1 + $0x78] sm:$0xff]  ;;  %248 = vmatprep.subr.mxu0 %v53_v0  ;;  %v36_v3 = vld [vmem:[%s478_s1 + $0x70] sm:$0xff]  ;;  %v35_v5 = vld [vmem:[%s478_s1 + $0x68] sm:$0xff] }
   0x3   :  { %249 = vmatpush3.msra.mxu0 %v37_v1  ;;  %v50_v6 = vld [vmem:[%s478_s1 + $0xe0] sm:$0xff]  ;;  %v49_v8 = vld [vmem:[%s478_s1 + $0xd8] sm:$0xff]  ;;  %v48_v10 = vld [vmem:[%s478_s1 + $0xd0] sm:$0xff] }
   0x4   :  { %250 = vmatprep.subr.mxu0 %v52_v2  ;;  %v34_v7 = vld [vmem:[%s478_s1 + $0x60] sm:$0xff]  ;;  %v33_v9 = vld [vmem:[%s478_s1 + $0x58] sm:$0xff]  ;;  %v32_v11 = vld [vmem:[%s478_s1 + $0x50] sm:$0xff] }
   0x5   :  { %251 = vmatpush3.msra.mxu0 %v36_v3  ;;  %v47_v12 = vld [vmem:[%s478_s1 + $0xc8] sm:$0xff]  ;;  %v245_v13 = vld.sshfl [vmem:[%s477_s0] sm:$0x33 pattern:$0x76325410] }
   0x6   :  { %252 = vmatprep.subr.mxu0 %v51_v4  ;;  %v31_v14 = vld [vmem:[%s478_s1 + $0x48] sm:$0xff]  ;;  %v69_v15 = vcombine.high %v245_v13, %v245_v13 }
   0x7   :  { %253 = vmatpush3.msra.mxu0 %v35_v5 }
   0x8   :  { %254 = vmatprep.subr.mxu0 %v50_v6 }
   0x9   :  { %255 = vmatpush3.msra.mxu0 %v34_v7 }
   0xa   :  { %256 = vmatprep.subr.mxu0 %v49_v8 }
   0xb   :  { %257 = vmatpush3.msra.mxu0 %v33_v9 }
   0xc   :  { %258 = vmatprep.subr.mxu0 %v48_v10 }
   0xd   :  { %10 = vsyncpa [#allocation3], 0  ;;  %259 = vmatpush3.msra.mxu0 %v32_v11  ;;  %v46_v16 = vld [vmem:[%s478_s1 + $0xc0] sm:$0xff]  ;;  %136 = vmatprep.mubr.f32.mxu0 %v69_v15  ;;  %v45_v18 = vld [vmem:[%s478_s1 + $0xb8] sm:$0xff]  ;;  %v324_v34 = vmov 0.0   ;;  %vm325_vm0 = vmmov 0  }
   0xe   :  { %260 = vmatprep.subr.mxu0 %v47_v12  ;;  %v30_v17 = vld [vmem:[%s478_s1 + $0x40] sm:$0xff]  ;;  %v29_v19 = vld [vmem:[%s478_s1 + $0x38] sm:$0xff]  ;;  %v44_v20 = vld [vmem:[%s478_s1 + $0xb0] sm:$0xff]  ;;  %288 = vmatprep.subr.mxu1 %v324_v34  ;;  %vm154_vm1 = vcmask 261120   ;;  %s326_s18 = smov [#allocation2]   ;;  %vm228_vm2 = vcmask 25600  }
   0xf   :  { %261 = vmatpush3.msra.mxu0 %v31_v14  ;;  %v28_v21 = vld [vmem:[%s478_s1 + $0x30] sm:$0xff]  ;;  %v43_v22 = vld [vmem:[%s478_s1 + $0xa8] sm:$0xff]  ;;  %v42_v24 = vld [vmem:[%s478_s1 + $0xa0] sm:$0xff]  ;;  %296 = vmatprep.mubr.msk.f32.mxu1 %vm325_vm0, %v324_v34 }
  0x10   :  { %262 = vmatprep.subr.mxu0 %v46_v16  ;;  %v27_v23 = vld [vmem:[%s478_s1 + $0x28] sm:$0xff]  ;;  %v26_v25 = vld [vmem:[%s478_s1 + $0x20] sm:$0xff]  ;;  %v41_v26 = vld [vmem:[%s478_s1 + $0x98] sm:$0xff] }
  0x11   :  { %263 = vmatpush3.msra.mxu0 %v30_v17  ;;  %v25_v27 = vld [vmem:[%s478_s1 + $0x18] sm:$0xff]  ;;  %v40_v28 = vld [vmem:[%s478_s1 + $0x90] sm:$0xff]  ;;  %v39_v30 = vld [vmem:[%s478_s1 + $0x88] sm:$0xff] }
  0x12   :  { %264 = vmatprep.subr.mxu0 %v45_v18  ;;  %v24_v29 = vld [vmem:[%s478_s1 + $0x10] sm:$0xff]  ;;  %v23_v31 = vld [vmem:[%s478_s1 + $0x8] sm:$0xff]  ;;  %v38_v32 = vld [vmem:[%s478_s1 + $0x80] sm:$0xff] }
  0x13   :  { %265 = vmatpush3.msra.mxu0 %v29_v19  ;;  %v22_v33 = vld [vmem:[%s478_s1] sm:$0xff]  ;;  %v146_v35 = vld [vmem:[%s480_s3 + $0x18] sm:$0xff]  ;;  %v145_v36 = vld [vmem:[%s480_s3 + $0x10] sm:$0xff] }
  0x14   :  { %266 = vmatprep.subr.mxu0 %v44_v20  ;;  %289 = vmatpush3.msra.mxu1 %v146_v35  ;;  %v144_v37 = vld [vmem:[%s480_s3 + $0x8] sm:$0xff]  ;;  %v143_v38 = vld [vmem:[%s480_s3] sm:$0xff]  ;;  %s236_s3 = sshll.u32 %s326_s18, 4  ;;  %s237_s3 = int_to_ptr.vmem [resolvable:$true] %s236_s3 }
  0x15   :  { %267 = vmatpush3.msra.mxu0 %v28_v21  ;;  %290 = vmatprep.subr.mxu1 %v324_v34  ;;  %v244_v40 = vld [vmem:[%s479_s2] ss:$0 sm:$0xff]  ;;  %s302_s19 = scalar_lea.vmem %s237_s3, 32  ;;  %p307_p1 = scmp.lt.s32.totalorder %s237_s3, %s237_s3 }
  0x16   :  { %268 = vmatprep.subr.mxu0 %v43_v22  ;;  %291 = vmatpush3.msra.mxu1 %v145_v36  ;;  %v246_v45 = vld [vmem:[%s481_s4] ss:$0 sm:$0xff]  ;;  %p303_p0 = scmp.ne.s32.totalorder %s237_s3, %s302_s19  ;;  %p308_p2 = scmp.lt.s32.totalorder %s302_s19, %s302_s19 }
  0x17   :  { %269 = vmatpush3.msra.mxu0 %v27_v23  ;;  %292 = vmatprep.subr.mxu1 %v324_v34 }
  0x18   :  { %270 = vmatprep.subr.mxu0 %v42_v24  ;;  %293 = vmatpush3.msra.mxu1 %v144_v37  ;;  %p309_p3 = por %p308_p2, %p307_p1 }
  0x19   :  { %271 = vmatpush3.msra.mxu0 %v26_v25  ;;  %294 = vmatprep.subr.mxu1 %v324_v34 }
  0x1a   :  { %272 = vmatprep.subr.mxu0 %v41_v26  ;;  %295 = vmatpush3.msra.mxu1 %v143_v38  ;;  %p310_p4 = pnand %p309_p3, %p303_p0 }
  0x1b   :  { %273 = vmatpush3.msra.mxu0 %v25_v27 }
  0x1c   :  { %274 = vmatprep.subr.mxu0 %v40_v28 }
  0x1d   :  { %275 = vmatpush3.msra.mxu0 %v24_v29 }
  0x1e   :  { %276 = vmatprep.subr.mxu0 %v39_v30 }
  0x1f   :  { %277 = vmatpush3.msra.mxu0 %v23_v31 }
  0x20   :  { %278 = vmatprep.subr.mxu0 %v38_v32 }
  0x21   :  { %279 = vmatpush3.msra.mxu0 %v22_v33 }
  0x22   :  { %137 = vmatmul.mubr.f32.vlgmr.msra.gmra.mxu0 %v245_v13 }
  0xe2   :  { %v280_v39 = vpop.f32.mrf.mxu0 }
  0xe4   :  { %v281_v41 = vpop.f32.mrf.mxu0 }
  0xe5   :  { %v282_v42 = vadd.f32 %v281_v41, %v280_v39 }
  0xe7   :  { %v139_v43 = vadd.f32 %v282_v42, %v244_v40 }
  0xe9   :  { %v142_v44 = vmax.f32 %v139_v43, 0.0 }
  0xeb   :  { %297 = vmatmul.mubr.msk.f32.vlgmr.msra.gmra.mxu1 %vm154_vm1, %v142_v44 }
 0x1ab   :  { %v224_v46 = vpop.f32.mrf.mxu1 }
 0x1ac   :  { %v225_v47 = vadd.f32 %v246_v45, %v224_v46 }
 0x1ad   :  { %v298_v48 = vpop.f32.mrf.mxu1 }
 0x1ae   :  { %229 = vst.msk [vmem:[#allocation2] sm:$0x3] %vm228_vm2, %v225_v47 }
 0x1af   :  { %313 = shalt.err (!%p310_p4)
}
 0x1b0   :  { %239 = dma.vmem_to_hbm [thread:$0]  %s237_s3, 32, %s482_s5, [#allocation3]  }
 0x1b1   :  { %322 = dma.done.wait [#allocation3], 32  }
 0x1b2   :  { %323 = vsyncadd [#allocation3], 4294967264 }
 0x1b3   :  { %243 = vsyncpa [#allocation3], 1 }

</bundles_post_ra>
